<compile_context>
chip_gen: v7x
topology: tpu7x:2x2x1
jax: 0.10.0
libtpu: 0.0.40
codegen_flags: <defaults>
</compile_context>

<pallas_src>
import jax
import jax.numpy as jnp
from jax import lax
from jax.experimental import pallas as pl
from jax.experimental.pallas import tpu as pltpu


def _ffia_kernel(feat_ref, ctx_ref, w1t_ref, wctxt_ref, bctx_ref, w2_ref,
                 out_x_ref, out_attn_ref):
    # feat_ref:     (Bt, F, N)  f32, channels-first, flattened spatial (n = h*W + w)
    # ctx_ref:      (Bt, C, 1)  f32, context as per-batch column
    # w1t_ref:      (Hd, F)     bf16, fc1_feature weight transposed
    # wctxt_ref:    (Hd, C)     f32,  fc1_context weight transposed
    # bctx_ref:     (Hd, 1)     f32,  fc1_context bias column
    # w2_ref:       (Hd, 1)     f32,  fc2 weight column (bias dropped: softmax
    #                                 shift-invariance => no output effect)
    # out_x_ref:    (Bt, F, 1)  f32
    # out_attn_ref: (Bt, 1, N)  f32  (lane-dense over the N spatial positions)
    bt = feat_ref.shape[0]

    w1t = w1t_ref[...]        # (Hd, F) bf16
    wctxt = wctxt_ref[...]    # (Hd, C)
    bctx = bctx_ref[...]      # (Hd, 1)
    w2 = w2_ref[...]          # (Hd, 1)

    # Bt is a small trace-time constant; a static unrolled loop keeps every
    # slice static and every store layout-matched (no relayouts).
    for b in range(bt):
        feat_b = feat_ref[b]                                        # (F, N) f32
        ctx_b = ctx_ref[b]                                          # (C, 1) f32

        # fc1_context: (Hd, C) @ (C, 1) + bias -> (Hd, 1).
        ch = jnp.dot(wctxt, ctx_b,
                     preferred_element_type=jnp.float32) + bctx     # (Hd, 1)

        # fc1_feature on the MXU in bf16: (Hd, F) @ (F, N) -> (Hd, N).
        # N stays on lanes, Hd on sublanes for the whole hidden stage.
        fh = jnp.dot(w1t, feat_b.astype(jnp.bfloat16),
                     preferred_element_type=jnp.float32)             # (Hd, N)

        h = jnp.maximum(fh + ch, 0.0)                                # (Hd, N)

        # fc2 (Hd -> 1): contract Hd over the sublane axis -> lane-dense
        # (1, N) logits, no relayout needed before the softmax.
        logits = jnp.sum(h * w2, axis=0, keepdims=True)              # (1, N)

        # Exact softmax over the N spatial positions (single lane-row).
        m = jnp.max(logits, axis=-1, keepdims=True)                  # (1, 1)
        e = jnp.exp(logits - m)                                      # (1, N)
        attn = e / jnp.sum(e, axis=-1, keepdims=True)                # (1, N)

        out_attn_ref[b] = attn

        # Weighted feature sum on the MXU, f32 precision, streaming M=F rows:
        # (F, N) contracted with (1, N) over N -> (F, 1).
        out_x_ref[b] = lax.dot_general(
            feat_b, attn, (((1,), (1,)), ((), ())),
            preferred_element_type=jnp.float32)                      # (F, 1)


def _pick_block_batch(batch, n, fdim, itemsize=4, tile_cap_bytes=8 << 20):
    """Per-step batch block Bt.

    * Bt divides B (so every grid step is full).
    * Keep B // Bt >= 2 whenever B >= 2, so the "parallel" grid axis can be
      split across v7x's two TensorCores (no effect on single-TC v5e/v6e).
    * Cap the per-step feature tile at ~8 MiB (x2 for double buffering) so it
      fits comfortably inside v7x's 64 MiB VMEM / v5e's tighter scoped VMEM,
      while still being large enough to amortise the ~0.35us per-step cost.
    """
    best = 1
    for bt in range(1, batch + 1):
        if batch % bt:
            continue
        if batch >= 2 and batch // bt < 2:
            break
        if bt * n * fdim * itemsize > tile_cap_bytes:
            break
        best = bt
    return best


def feedforward_image_attention(feature_nchw, context, params):
    """feature_nchw: (B, F, H, W) f32, context: (B, C) f32.

    Returns (x, attention) with shapes (B, F) and (B, H*W), matching the
    PyTorch module's forward.
    """
    w1, wctx, bctx, w2, b2 = params
    del b2  # softmax shift-invariance: fc2 bias cannot change either output
    B, Fdim, H, W = feature_nchw.shape
    C = context.shape[1]
    Hd = w1.shape[1]
    N = H * W

    # Pure reshape of contiguous NCHW memory -> no transpose / extra HBM pass.
    feat = feature_nchw.reshape(B, Fdim, N)                  # (B, F, N)
    ctx_col = context.reshape(B, C, 1)                       # (B, C, 1)
    # Tiny parameter relayouts done once in the wrapper (negligible bytes).
    w1t = jnp.transpose(w1).astype(jnp.bfloat16)             # (Hd, F) bf16
    wctx_t = jnp.transpose(wctx)                             # (Hd, C)
    bctx_col = bctx.reshape(Hd, 1)                           # (Hd, 1)
    w2_col = w2.reshape(Hd, 1)                               # (Hd, 1)

    Bt = _pick_block_batch(B, N, Fdim, itemsize=feat.dtype.itemsize)
    grid = (B // Bt,)

    feat_tile_bytes = Bt * Fdim * N * feat.dtype.itemsize
    # Explicit scoped-VMEM limit: covers double-buffered feature tiles plus
    # weights/outputs with headroom; >= the 16 MiB v5e default, <= 32 MiB so
    # it stays safe on v7x's 64 MiB physical VMEM.
    vmem_limit = int(min(32 << 20, max(16 << 20, 4 * feat_tile_bytes)))

    grid_spec = pltpu.PrefetchScalarGridSpec(
        num_scalar_prefetch=0,
        grid=grid,
        in_specs=[
            pl.BlockSpec((Bt, Fdim, N), lambda g: (g, 0, 0)),   # feature (NCHW)
            pl.BlockSpec((Bt, C, 1), lambda g: (g, 0, 0)),      # context column
            pl.BlockSpec((Hd, Fdim), lambda g: (0, 0)),         # w1^T (bf16)
            pl.BlockSpec((Hd, C), lambda g: (0, 0)),            # wctx^T
            pl.BlockSpec((Hd, 1), lambda g: (0, 0)),            # bctx column
            pl.BlockSpec((Hd, 1), lambda g: (0, 0)),            # w2 column
        ],
        out_specs=[
            pl.BlockSpec((Bt, Fdim, 1), lambda g: (g, 0, 0)),   # x
            pl.BlockSpec((Bt, 1, N), lambda g: (g, 0, 0)),      # attn (lane-dense N)
        ],
    )

    out_x, out_attn = pl.pallas_call(
        _ffia_kernel,
        grid_spec=grid_spec,
        out_shape=(
            jax.ShapeDtypeStruct((B, Fdim, 1), jnp.float32),
            jax.ShapeDtypeStruct((B, 1, N), jnp.float32),
        ),
        compiler_params=pltpu.CompilerParams(
            dimension_semantics=("parallel",),
            vmem_limit_bytes=vmem_limit,
        ),
    )(feat, ctx_col, w1t, wctx_t, bctx_col, w2_col)

    return out_x.reshape(B, Fdim), out_attn.reshape(B, N)


def reference(feature_nchw, context, params):
    """Pure-JAX reference matching the PyTorch forward (fc2 bias included)."""
    w1, wctx, bctx, w2, b2 = params
    B, Fdim, H, W = feature_nchw.shape
    N = H * W
    feat_fn = feature_nchw.reshape(B, Fdim, N)                      # (B, F, N)
    fh = jnp.einsum('bfn,fh->bnh', feat_fn, w1)                     # conv1x1, no bias
    ch = context @ wctx + bctx                                      # (B, Hd)
    x = jax.nn.relu(fh + ch[:, None, :])
    logits = jnp.einsum('bnh,ho->bno', x, w2)[..., 0] + b2          # (B, N)
    attn = jax.nn.softmax(logits, axis=1)
    out = jnp.einsum('bfn,bn->bf', feat_fn, attn)
    return out, attn


if __name__ == "__main__":
    # Small shapes consistent with the module's forward.
    B, Fdim, H, W = 2, 128, 8, 8          # image_feature_size=128 (synthetic, not 2048)
    C, Hd = 32, 32                        # context_size=32, hidden_size=32

    key = jax.random.PRNGKey(0)
    k_feat, k_ctx, k_w1, k_wc, k_bc, k_w2, k_b2 = jax.random.split(key, 7)

    feature = jax.random.normal(k_feat, (B, Fdim, H, W), dtype=jnp.float32)
    context = jax.random.normal(k_ctx, (B, C), dtype=jnp.float32)

    # Deterministic synthetic parameters (shapes from nn.Module __init__):
    #   fc1_feature.weight: (Hd, F, 1, 1) -> stored here as (F, Hd)
    #   fc1_context.weight: (Hd, C), bias (Hd,) -> stored as (C, Hd), (Hd,)
    #   fc2.weight: (1, Hd, 1, 1), bias (1,)   -> stored as (Hd, 1), (1,)
    w1 = jax.random.normal(k_w1, (Fdim, Hd), dtype=jnp.float32) * 0.05
    wctx = jax.random.normal(k_wc, (C, Hd), dtype=jnp.float32) * 0.1
    bctx = jax.random.normal(k_bc, (Hd,), dtype=jnp.float32) * 0.1
    w2 = jax.random.normal(k_w2, (Hd, 1), dtype=jnp.float32) * 0.1
    b2 = jax.random.normal(k_b2, (1,), dtype=jnp.float32) * 0.1
    params = (w1, wctx, bctx, w2, b2)

    out_x, out_attn = feedforward_image_attention(feature, context, params)
    out_x, out_attn = jax.block_until_ready((out_x, out_attn))

    ref_x, ref_attn = reference(feature, context, params)
    assert out_x.shape == (B, Fdim) and out_attn.shape == (B, H * W)
    # Tolerances account for the intentional bf16 cast of the fc1 matmul
    # operands (softmax itself is exact; rows sum to 1 in f32).
    assert jnp.allclose(out_attn, ref_attn, atol=2e-3, rtol=2e-3)
    assert jnp.allclose(out_x, ref_x, atol=2e-3, rtol=2e-3)

    print("KERNEL_OK")
</pallas_src>

<mosaic_0001>
module attributes {stable_mosaic.version = 11 : i64} {
  func.func @_ffia_kernel(%arg0: i32, %arg1: memref<1x128x64xf32, #tpu.memory_space<vmem>>, %arg2: memref<1x32x1xf32, #tpu.memory_space<vmem>>, %arg3: memref<32x128xbf16, #tpu.memory_space<vmem>>, %arg4: memref<32x32xf32, #tpu.memory_space<vmem>>, %arg5: memref<32x1xf32, #tpu.memory_space<vmem>>, %arg6: memref<32x1xf32, #tpu.memory_space<vmem>>, %arg7: memref<1x128x1xf32, #tpu.memory_space<vmem>>, %arg8: memref<1x1x64xf32, #tpu.memory_space<vmem>>) attributes {dimension_semantics = [#tpu.dimension_semantics<parallel>], iteration_bounds = array<i64: 2>, scalar_prefetch = 0 : i64, scratch_operands = 0 : i64, tpu.core_type = #tpu.core_type<tc>, window_params = [{transform_indices = @transform_0, window_bounds = array<i64: 1, 128, 64>}, {transform_indices = @transform_1, window_bounds = array<i64: 1, 32, 1>}, {pipeline_mode = #tpu.pipeline_mode<synchronous>, transform_indices = @transform_2, window_bounds = array<i64: 32, 128>}, {pipeline_mode = #tpu.pipeline_mode<synchronous>, transform_indices = @transform_3, window_bounds = array<i64: 32, 32>}, {pipeline_mode = #tpu.pipeline_mode<synchronous>, transform_indices = @transform_4, window_bounds = array<i64: 32, 1>}, {pipeline_mode = #tpu.pipeline_mode<synchronous>, transform_indices = @transform_5, window_bounds = array<i64: 32, 1>}, {transform_indices = @transform_6, window_bounds = array<i64: 1, 128, 1>}, {transform_indices = @transform_7, window_bounds = array<i64: 1, 1, 64>}]} {
    %c0 = arith.constant 0 : index
    %c0_0 = arith.constant 0 : index
    %0 = vector.load %arg3[%c0, %c0_0] : memref<32x128xbf16, #tpu.memory_space<vmem>>, vector<32x128xbf16>
    %c0_1 = arith.constant 0 : index
    %c0_2 = arith.constant 0 : index
    %1 = vector.load %arg4[%c0_1, %c0_2] : memref<32x32xf32, #tpu.memory_space<vmem>>, vector<32x32xf32>
    %c0_3 = arith.constant 0 : index
    %c0_4 = arith.constant 0 : index
    %2 = vector.load %arg5[%c0_3, %c0_4] : memref<32x1xf32, #tpu.memory_space<vmem>>, vector<32x1xf32>
    %c0_5 = arith.constant 0 : index
    %c0_6 = arith.constant 0 : index
    %3 = vector.load %arg6[%c0_5, %c0_6] : memref<32x1xf32, #tpu.memory_space<vmem>>, vector<32x1xf32>
    %c0_7 = arith.constant 0 : index
    %c0_8 = arith.constant 0 : index
    %c0_9 = arith.constant 0 : index
    %4 = vector.load %arg1[%c0_7, %c0_8, %c0_9] : memref<1x128x64xf32, #tpu.memory_space<vmem>>, vector<1x128x64xf32>
    %5 = vector.shape_cast %4 : vector<1x128x64xf32> to vector<128x64xf32>
    %c0_10 = arith.constant 0 : index
    %c0_11 = arith.constant 0 : index
    %c0_12 = arith.constant 0 : index
    %6 = vector.load %arg2[%c0_10, %c0_11, %c0_12] : memref<1x32x1xf32, #tpu.memory_space<vmem>>, vector<1x32x1xf32>
    %7 = vector.shape_cast %6 : vector<1x32x1xf32> to vector<32x1xf32>
    %cst = arith.constant dense<0.000000e+00> : vector<32x1xf32>
    %8 = tpu.matmul %1, %7, %cst {dimension_numbers = #tpu.dot_dimension_numbers<[1], [0], [0], [1], [0, 0, 1, 1], [], []>} : vector<32x32xf32>, vector<32x1xf32>, vector<32x1xf32> -> vector<32x1xf32>
    %9 = arith.addf %8, %2 : vector<32x1xf32>
    %10 = arith.truncf %5 : vector<128x64xf32> to vector<128x64xbf16>
    %cst_13 = arith.constant dense<0.000000e+00> : vector<32x64xf32>
    %11 = tpu.matmul %0, %10, %cst_13 {dimension_numbers = #tpu.dot_dimension_numbers<[1], [0], [0], [1], [0, 0, 1, 1], [], []>} : vector<32x128xbf16>, vector<128x64xbf16>, vector<32x64xf32> -> vector<32x64xf32>
    %12 = vector.broadcast %9 : vector<32x1xf32> to vector<32x64xf32>
    %13 = arith.addf %11, %12 : vector<32x64xf32>
    %cst_14 = arith.constant 0.000000e+00 : f32
    %14 = vector.broadcast %cst_14 : f32 to vector<32x64xf32>
    %15 = arith.maximumf %13, %14 : vector<32x64xf32>
    %16 = vector.broadcast %3 : vector<32x1xf32> to vector<32x64xf32>
    %17 = arith.mulf %15, %16 : vector<32x64xf32>
    %cst_15 = arith.constant dense<0.000000e+00> : vector<64xf32>
    %18 = vector.multi_reduction <add>, %17, %cst_15 [0] : vector<32x64xf32> to vector<64xf32>
    %19 = vector.shape_cast %18 : vector<64xf32> to vector<1x64xf32>
    %cst_16 = arith.constant dense<0xFF800000> : vector<1xf32>
    %20 = vector.multi_reduction <maximumf>, %19, %cst_16 [1] : vector<1x64xf32> to vector<1xf32>
    %21 = vector.shape_cast %20 : vector<1xf32> to vector<1x1xf32>
    %22 = vector.broadcast %21 : vector<1x1xf32> to vector<1x64xf32>
    %23 = arith.subf %19, %22 : vector<1x64xf32>
    %24 = math.exp %23 : vector<1x64xf32>
    %cst_17 = arith.constant dense<0.000000e+00> : vector<1xf32>
    %25 = vector.multi_reduction <add>, %24, %cst_17 [1] : vector<1x64xf32> to vector<1xf32>
    %26 = vector.shape_cast %25 : vector<1xf32> to vector<1x1xf32>
    %27 = vector.broadcast %26 : vector<1x1xf32> to vector<1x64xf32>
    %28 = arith.divf %24, %27 : vector<1x64xf32>
    %c0_18 = arith.constant 0 : index
    %c0_19 = arith.constant 0 : index
    %c0_20 = arith.constant 0 : index
    %29 = vector.load %arg8[%c0_18, %c0_19, %c0_20] : memref<1x1x64xf32, #tpu.memory_space<vmem>>, vector<1x1x64xf32>
    %30 = vector.shape_cast %29 : vector<1x1x64xf32> to vector<1x64xf32>
    %31 = vector.shape_cast %28 : vector<1x64xf32> to vector<1x1x64xf32>
    tpu.vector_store %arg8[%c0_18, %c0_19, %c0_20], %31 {strides = array<i32>} : memref<1x1x64xf32, #tpu.memory_space<vmem>>, vector<1x1x64xf32>,
    %cst_21 = arith.constant dense<0.000000e+00> : vector<128x1xf32>
    %32 = tpu.matmul %5, %28, %cst_21 {dimension_numbers = #tpu.dot_dimension_numbers<[1], [1], [0], [0], [0, 0, 1, 0], [], []>} : vector<128x64xf32>, vector<1x64xf32>, vector<128x1xf32> -> vector<128x1xf32>
    %c0_22 = arith.constant 0 : index
    %c0_23 = arith.constant 0 : index
    %c0_24 = arith.constant 0 : index
    %33 = vector.load %arg7[%c0_22, %c0_23, %c0_24] : memref<1x128x1xf32, #tpu.memory_space<vmem>>, vector<1x128x1xf32>
    %34 = vector.shape_cast %33 : vector<1x128x1xf32> to vector<128x1xf32>
    %35 = vector.shape_cast %32 : vector<128x1xf32> to vector<1x128x1xf32>
    tpu.vector_store %arg7[%c0_22, %c0_23, %c0_24], %35 {strides = array<i32>} : memref<1x128x1xf32, #tpu.memory_space<vmem>>, vector<1x128x1xf32>,
    return
  }
  func.func @transform_0(%arg0: i32) -> (i32, i32, i32) {
    %c0_i32 = arith.constant 0 : i32
    %c0_i32_0 = arith.constant 0 : i32
    %c0_i32_1 = arith.constant 0 : i32
    return %arg0, %c0_i32, %c0_i32_0 : i32, i32, i32
  }
  func.func @transform_1(%arg0: i32) -> (i32, i32, i32) {
    %c0_i32 = arith.constant 0 : i32
    %c0_i32_0 = arith.constant 0 : i32
    %c0_i32_1 = arith.constant 0 : i32
    return %arg0, %c0_i32, %c0_i32_0 : i32, i32, i32
  }
  func.func @transform_2(%arg0: i32) -> (i32, i32) {
    %c0_i32 = arith.constant 0 : i32
    %c0_i32_0 = arith.constant 0 : i32
    %c0_i32_1 = arith.constant 0 : i32
    return %c0_i32, %c0_i32_0 : i32, i32
  }
  func.func @transform_3(%arg0: i32) -> (i32, i32) {
    %c0_i32 = arith.constant 0 : i32
    %c0_i32_0 = arith.constant 0 : i32
    %c0_i32_1 = arith.constant 0 : i32
    return %c0_i32, %c0_i32_0 : i32, i32
  }
  func.func @transform_4(%arg0: i32) -> (i32, i32) {
    %c0_i32 = arith.constant 0 : i32
    %c0_i32_0 = arith.constant 0 : i32
    %c0_i32_1 = arith.constant 0 : i32
    return %c0_i32, %c0_i32_0 : i32, i32
  }
  func.func @transform_5(%arg0: i32) -> (i32, i32) {
    %c0_i32 = arith.constant 0 : i32
    %c0_i32_0 = arith.constant 0 : i32
    %c0_i32_1 = arith.constant 0 : i32
    return %c0_i32, %c0_i32_0 : i32, i32
  }
  func.func @transform_6(%arg0: i32) -> (i32, i32, i32) {
    %c0_i32 = arith.constant 0 : i32
    %c0_i32_0 = arith.constant 0 : i32
    %c0_i32_1 = arith.constant 0 : i32
    return %arg0, %c0_i32, %c0_i32_0 : i32, i32, i32
  }
  func.func @transform_7(%arg0: i32) -> (i32, i32, i32) {
    %c0_i32 = arith.constant 0 : i32
    %c0_i32_0 = arith.constant 0 : i32
    %c0_i32_1 = arith.constant 0 : i32
    return %arg0, %c0_i32, %c0_i32_0 : i32, i32, i32
  }
}

</mosaic_0001>

<bundles_post_ra>
// kernel: tpu_custom_call.1
= control target key start
LH: loop header
LB: loop body
LE: loop exit
PB: predicated region body
PF: predicated region fallthrough
CT: control target
= control target key end

     0   :  { %13 = vsyncpa [#allocation3], 0  ;;  %s1318_s0 = inlined_call_operand.vmem [shape: f32[2,128,64], index: 0, kind: input, shape index: {}]   ;;  %s1319_s1 = inlined_call_operand.vmem [shape: f32[2,32,1], index: 1, kind: input, shape index: {}]   ;;  %s1320_s2 = inlined_call_operand.vmem [shape: bf16[32,128], index: 2, kind: input, shape index: {}]   ;;  %s1321_s3 = inlined_call_operand.vmem [shape: f32[32,32], index: 3, kind: input, shape index: {}]   ;;  %s1322_s4 = inlined_call_operand.vmem [shape: f32[32,1], index: 4, kind: input, shape index: {}]   ;;  %s1323_s5 = inlined_call_operand.vmem [shape: f32[32,1], index: 5, kind: input, shape index: {}]   ;;  %s1324_s6 = inlined_call_operand.vmem [shape: f32[2,128,1], index: 6, kind: output, shape index: {0}]   ;;  %s1325_s7 = inlined_call_operand.hbm [shape: f32[2,1,64], index: 7, kind: output, shape index: {1}]  }
   0x1   :  { %15 = vsyncpa [#allocation3 + $0x1], 0  ;;  %s1018_s24 = smov 0   ;;  %s1020_s25 = smov 0  }
   0x2   :  { %s1022_s26 = smov 0   ;;  %s1024_s27 = smov 0  }
   0x3 LB: > { %s1039_s28 = sadd.s32 4294967295, %s974_s27   ;;  %s782_s29 = sadd.s32 4294967294, %s974_s27   ;;  %s974_s27 = sphi %s1024_s27, %s1331_s27   ;;  %s970_s26 = sphi %s1022_s26, %s1330_s26   ;;  %s966_s25 = sphi %s1020_s25, %s1329_s25   ;;  %s962_s24 = sphi %s1018_s24, %s1328_s24  }
   0x4   : > { %s1043_s30 = sadd.s32 1, %s974_s27   ;;  %s190_s8 = sadd.s32 1, %s970_s26 }
   0x5   : > { %s187_s9 = ssub.s32 %s974_s27, %s1043_s30  ;;  %p200_p0 = scmp.ne.s32.totalorder %s970_s26, %s966_s25 }
   0x6   : > { %p188_p1 = scmp.eq.s32.totalorder %s187_s9, 0  ;;  %p201_p2 = scmp.eq.s32.totalorder %s1039_s28, 1 }
   0x7   : > { %p206_p3 = scmp.ne.s32.totalorder %s966_s25, %s962_s24  ;;  %p207_p4 = scmp.eq.s32.totalorder %s782_s29, 1 }
   0x8   : > { %s1054_s10 = scalar_select %p188_p1, %s970_s26, %s190_s8  }
   0x9   : > { %p1056_p5 = por %p201_p2, %p200_p0  ;;  %p1060_p6 = por %p207_p4, %p206_p3 }
   0xa   : > { %p785_p7 = scmp.ge.s32.totalorder %s974_s27, 1  ;;  %p253_p8 = scmp.lt.s32.totalorder %s974_s27, 3 }
   0xc   : > { %p254_p9 = pnand %p785_p7, %p253_p8 }
   0xd   : > { %p294_p10 = scmp.lt.s32.totalorder (!%p254_p9), %s1039_s28, 1  ;;  %v314_v0 = vld [vmem:[%s1321_s3] sm:$0xff] (!%p254_p9)  ;;  %vm346_vm0 = vcmask (!%p254_p9), 261120   ;;  %v315_v19 = vld [vmem:[%s1321_s3 + $0x8] sm:$0xff] (!%p254_p9)  ;;  %v316_v20 = vld [vmem:[%s1321_s3 + $0x10] sm:$0xff] (!%p254_p9)  ;;  %v976_v36 = vmov (!%p254_p9), 0  }
   0xe   : > { %257 = sbr.rel (%p254_p9) target bundleno = 903 (0x387), region = 44  ;;  %830 = vmatprep.mubr.msk.f32.mxu0 (!%p254_p9), %vm346_vm0, %v314_v0  ;;  %v906_v1 = vld [vmem:[%s1320_s2] sm:$0xff] (!%p254_p9)   ;;  %v317_v24 = vld [vmem:[%s1321_s3 + $0x18] sm:$0xff] (!%p254_p9)  ;;  %v907_v35 = vld [vmem:[%s1320_s2 + $0x8] sm:$0xff] (!%p254_p9)   ;;  %904 = vset.pattern.permute.xlu0 (!%p254_p9), %v976_v36  ;;  %vm561_vm1 = vcmask (!%p254_p9), 523264   ;;  %s292_s9 = sand.u32 (!%p254_p9), 1, %s966_s25  }
   0xf   : > { %852 = vmatprep.mubr.bf16.mxu1 (!%p254_p9), %v906_v1  ;;  %905 = vset.pattern.permute.xlu1 (!%p254_p9), %v976_v36  ;;  %v319_v37 = vld [vmem:[%s1322_s4 + $0x8] sm:$0xff] (!%p254_p9)  ;;  %v318_v41 = vld [vmem:[%s1322_s4] sm:$0xff] (!%p254_p9)  ;;  %v321_v42 = vld [vmem:[%s1322_s4 + $0x18] sm:$0xff] (!%p254_p9)  ;;  %vm586_vm2 = vcmask (!%p254_p9), 516096   ;;  %s1203_s13 = scalar_lea.vmem (!%p254_p9), [#allocation2], %s292_s9  ;;  %s798_s14 = sshll.u32 (!%p254_p9), %s1039_s28, 4 }
  0x10   : > { %v320_v47 = vld [vmem:[%s1322_s4 + $0x10] sm:$0xff] (!%p254_p9)  ;;  %v322_v48 = vld [vmem:[%s1323_s5] sm:$0xff] (!%p254_p9)  ;;  %v323_v50 = vld [vmem:[%s1323_s5 + $0x8] sm:$0xff] (!%p254_p9)  ;;  %s690_s20 = sshll.u32 (!%p254_p9), %s1203_s13, 4  ;;  %s675_s21 = scalar_lea.sflag (!%p254_p9), [#allocation3], %s292_s9  ;;  %s691_s20 = int_to_ptr.vmem [resolvable:$true] %s690_s20 }
  0x11   : > { %v324_v51 = vld [vmem:[%s1323_s5 + $0x10] sm:$0xff] (!%p254_p9)  ;;  %v325_v52 = vld [vmem:[%s1323_s5 + $0x18] sm:$0xff] (!%p254_p9)  ;;  %s912_s23 = scalar_lea.vmem (!%p254_p9), %s691_s20, 16  ;;  %s977_s29 = smov (!%p254_p9), [#allocation2]  }
  0x12   : > { %p913_p11 = scmp.ne.s32.totalorder (!%p254_p9), %s691_s20, %s912_s23 }
  0x14   : > { %p914_p12 = pnand (!%p254_p9), %p913_p11, %p1056_p5 }
  0x15   : > { %s1072_s15 = scalar_select %p294_p10, %s1039_s28, 1 }
  0x16   : > { %p915_p13 = pneg %p914_p12 }
  0x17   : > { %s801_s18 = sshll.u32 %s1072_s15, 7  ;;  %s802_s19 = sshll.u32 %s1072_s15, 5 }
  0x18   : > { %s1084_s22 = scalar_lea.vmem %s1318_s0, %s801_s18  ;;  %s303_s8 = scalar_lea.vmem %s1319_s1, %s802_s19 }
  0x19   : > { %v342_v2 = vld [vmem:[%s303_s8] sm:$0xff]  ;;  %v343_v3 = vld [vmem:[%s303_s8 + $0x8] sm:$0xff]  ;;  %v344_v4 = vld [vmem:[%s303_s8 + $0x10] sm:$0xff]  ;;  %s1240_s19 = scalar_lea.hbm %s1325_s7, %s798_s14 }
  0x1a   : > { %v856_v5 = vpack.c.bf16 %v343_v3, %v342_v2  ;;  %v345_v6 = vld [vmem:[%s303_s8 + $0x18] sm:$0xff]  ;;  %v1090_v7 = vld [vmem:[%s1084_s22] sm:$0xff]  ;;  %v1093_v8 = vld [vmem:[%s1084_s22 + $0x8] sm:$0xff] }
  0x1b   : > { %v860_v9 = vpack.c.bf16 %v345_v6, %v344_v4  ;;  %v444_v10 = vpack.c.bf16 %v1093_v8, %v1090_v7  ;;  %v1098_v11 = vld [vmem:[%s1084_s22 + $0x10] sm:$0xff]  ;;  %v1101_v12 = vld [vmem:[%s1084_s22 + $0x18] sm:$0xff]  ;;  %v1106_v14 = vld [vmem:[%s1084_s22 + $0x20] sm:$0xff] }
  0x1c   : > { %857 = vmatprep.subr.bf16.mxu0 %v856_v5  ;;  %v445_v13 = vpack.c.bf16 %v1101_v12, %v1098_v11  ;;  %v1109_v15 = vld [vmem:[%s1084_s22 + $0x28] sm:$0xff]  ;;  %v1114_v17 = vld [vmem:[%s1084_s22 + $0x30] sm:$0xff]  ;;  %v1117_v18 = vld [vmem:[%s1084_s22 + $0x38] sm:$0xff] }
  0x1d   : > { %859 = vmatpush3.bf16.msra.mxu0 %v856_v5  ;;  %836 = vmatprep.subr.bf16.mxu1 %v444_v10  ;;  %v446_v16 = vpack.c.bf16 %v1109_v15, %v1106_v14  ;;  %v447_v21 = vpack.c.bf16 %v1117_v18, %v1114_v17  ;;  %v1129_v22 = vld [vmem:[%s1084_s22 + $0x40] sm:$0xff]  ;;  %v1132_v23 = vld [vmem:[%s1084_s22 + $0x48] sm:$0xff]  ;;  %v1142_v26 = vld [vmem:[%s1084_s22 + $0x50] sm:$0xff] }
  0x1e   : > { %861 = vmatprep.subr.bf16.mxu0 %v860_v9  ;;  %837 = vmatpush3.bf16.msra.mxu1 %v444_v10  ;;  %v448_v25 = vpack.c.bf16 %v1132_v23, %v1129_v22  ;;  %v1145_v27 = vld [vmem:[%s1084_s22 + $0x58] sm:$0xff]  ;;  %v1150_v29 = vld [vmem:[%s1084_s22 + $0x60] sm:$0xff]  ;;  %v1153_v30 = vld [vmem:[%s1084_s22 + $0x68] sm:$0xff] }
  0x1f   : > { %838 = vmatprep.subr.bf16.mxu1 %v445_v13  ;;  %v449_v28 = vpack.c.bf16 %v1145_v27, %v1142_v26  ;;  %v450_v31 = vpack.c.bf16 %v1153_v30, %v1150_v29  ;;  %v1158_v32 = vld [vmem:[%s1084_s22 + $0x70] sm:$0xff]  ;;  %v1161_v33 = vld [vmem:[%s1084_s22 + $0x78] sm:$0xff]  ;;  %s916_s22 = sshll.u32 %s977_s29, 4  ;;  %s917_s22 = int_to_ptr.vmem [resolvable:$false] %s916_s22 }
  0x20   : > { %v451_v34 = vpack.c.bf16 %v1161_v33, %v1158_v32  ;;  %s918_s8 = scalar_lea.vmem %s917_s22, 32  ;;  %p919_p0 = scmp.lt.s32.totalorder %s691_s20, %s917_s22 }
  0x21   : > { %863 = vmatpush3.bf16.msra.mxu0 %v860_v9  ;;  %p920_p1 = scmp.lt.s32.totalorder %s918_s8, %s912_s23 }
  0x22   : > { %839 = vmatpush3.bf16.msra.mxu1 %v445_v13 }
  0x23   : > { %840 = vmatprep.subr.bf16.mxu1 %v446_v16  ;;  %p921_p2 = por %p920_p1, %p919_p0 }
  0x24   : > { %831 = vmatmul.mubr.msk.f32.vlgmr.msra.gmra.mrb[0].mxu0 %vm346_vm0, %v315_v19 }
  0x25   : > { %833 = vmatprep.mubr.msk.f32.mxu0 %vm346_vm0, %v316_v20  ;;  %p922_p3 = pnand %p921_p2, %p915_p13 }
  0x26   : > { %841 = vmatpush3.bf16.msra.mxu1 %v446_v16 }
  0x27   : > { %842 = vmatprep.subr.bf16.mxu1 %v447_v21 }
  0x28   : > { %834 = vmatmul.mubr.msk.f32.gmra.mrb[2].mxu0 %vm346_vm0, %v317_v24 }
  0x2a   : > { %843 = vmatpush3.bf16.msra.mxu1 %v447_v21 }
  0x2b   : > { %844 = vmatprep.subr.bf16.mxu1 %v448_v25 }
  0x2e   : > { %845 = vmatpush3.bf16.msra.mxu1 %v448_v25 }
  0x2f   : > { %846 = vmatprep.subr.bf16.mxu1 %v449_v28 }
  0x32   : > { %847 = vmatpush3.bf16.msra.mxu1 %v449_v28 }
  0x33   : > { %848 = vmatprep.subr.bf16.mxu1 %v450_v31 }
  0x36   : > { %849 = vmatpush3.bf16.msra.mxu1 %v450_v31 }
  0x37   : > { %850 = vmatprep.subr.bf16.mxu1 %v451_v34 }
  0x3a   : > { %851 = vmatpush3.bf16.msra.mxu1 %v451_v34 }
  0x3d   : > { %853 = vmatmul.mubr.bf16.vlgmr.msra.gmra.mrb[0].mxu1 %v907_v35 }
  0xf7   : > { %v832_v38 = vpop.f32.mrb[0].mxu0 }
  0xf8   : > { %v431_v39 = vadd.f32 %v832_v38, %v319_v37  ;;  %v425_v40 = vpop.f32.mrb[1].mxu0 }
  0xf9   : > { %v426_v44 = vadd.f32 %v425_v40, %v318_v41 }
  0xfa   : > { %459 = vperm.xlu0 %904, %v431_v39  }
  0xfb   : > { %v835_v43 = vpop.f32.mrb[2].mxu0 }
  0xfc   : > { %v441_v45 = vadd.f32 %v835_v43, %v321_v42  ;;  %v435_v46 = vpop.f32.mrb[3].mxu0 }
  0xfd   : > { %v436_v49 = vadd.f32 %v435_v46, %v320_v47 }
  0xfe   : > { %469 = vperm.xlu1 %905, %v441_v45   ;;  %454 = vperm.xlu0 %904, %v426_v44  }
 0x102   : > { %464 = vperm.xlu1 %905, %v436_v49   ;;  %539 = vperm.xlu0 %904, %v322_v48  }
 0x106   : > { %544 = vperm.xlu1 %905, %v323_v50   ;;  %549 = vperm.xlu0 %904, %v324_v51  }
 0x10a   : > { %554 = vperm.xlu1 %905, %v325_v52  }
 0x110   : > { %v854_v53 = vpop.f32.mrb[0].mxu1 }
 0x111   : > { %v518_v54 = vpop.f32.mrb[1].mxu1 }
 0x112   : > { %v855_v55 = vpop.f32.mrb[2].mxu1 }
 0x113   : > { %v521_v56 = vpop.f32.mrb[3].mxu1 }
 0x179   : > { %v460_v57 = vpop.permute.xlu0 %459 }
 0x17a   : > { %v522_v61 = vadd.f32 %v521_v56, %v460_v57 }
 0x17c   : > { %v534_v2 = vmax.f32 %v522_v61, 0.0 }
 0x17d   : > { %v470_v58 = vpop.permute.xlu1 %469  ;;  %v455_v59 = vpop.permute.xlu0 %454 }
 0x17e   : > { %v519_v60 = vadd.f32 %v518_v54, %v455_v59  ;;  %v530_v3 = vadd.f32 %v855_v55, %v470_v58 }
 0x180   : > { %v533_v62 = vmax.f32 %v519_v60, 0.0  ;;  %v536_v16 = vmax.f32 %v530_v3, 0.0 }
 0x181   : > { %v465_v63 = vpop.permute.xlu1 %464  ;;  %v540_v0 = vpop.permute.xlu0 %539 }
 0x182   : > { %v527_v1 = vadd.f32 %v854_v53, %v465_v63  ;;  %v557_v5 = vmul.f32 %v540_v0, %v533_v62 }
 0x184   : > { %v535_v4 = vmax.f32 %v527_v1, 0.0  ;;  %v562_v19 = vsel %vm561_vm1, %v557_v5, 0.0 }
 0x185   : > { %v545_v6 = vpop.permute.xlu1 %544  ;;  %v550_v9 = vpop.permute.xlu0 %549 }
 0x186   : > { %v558_v10 = vmul.f32 %v545_v6, %v534_v2  ;;  %v559_v13 = vmul.f32 %v550_v9, %v535_v4 }
 0x188   : > { %v563_v20 = vsel %vm561_vm1, %v558_v10, 0.0  ;;  %v565_v25 = vsel %vm561_vm1, %v559_v13, 0.0 }
 0x189   : > { %v564_v21 = vadd.f32 %v563_v20, %v562_v19  ;;  %v555_v24 = vpop.permute.xlu1 %554 }
 0x18a   : > { %v560_v28 = vmul.f32 %v555_v24, %v536_v16 }
 0x18b   : > { %v566_v31 = vadd.f32 %v565_v25, %v564_v21 }
 0x18c   : > { %v567_v34 = vsel %vm561_vm1, %v560_v28, 0.0 }
 0x18d   : > { %v568_v35 = vadd.f32 %v567_v34, %v566_v31 }
 0x18f   : > { %v569_v36 = vrot.slane %v568_v35, 4 }
 0x191   : > { %v570_v37 = vadd.f32 %v569_v36, %v568_v35 }
 0x193   : > { %v571_v38 = vrot.slane %v570_v37, 2 }
 0x195   : > { %v572_v39 = vadd.f32 %v571_v38, %v570_v37 }
 0x197   : > { %v573_v40 = vrot.slane %v572_v39, 1 }
 0x199   : > { %v574_v41 = vadd.f32 %v573_v40, %v572_v39 }
 0x19b   : > { %v575_v42 = vsel %vm561_vm1, %v574_v41, -inf }
 0x19c   : > { %576 = vmax.xlane.f32.xlu0 %v575_v42 }
 0x229   : > { %v577_v43 = vpop.xlane.xlu0 %576 }
 0x22a   : > { %v578_v44 = vsub.f32 %v574_v41, %v577_v43 }
 0x22c   : > { %v579_v45 = vmul.f32 1.442695, %v578_v44 }
 0x22e   : > { %908 = vpow2.f32 %v579_v45 }
 0x238   : > { %v909_v46 = vpop.eup %908 }
 0x239   : > { %v581_v47 = vsel %vm561_vm1, %v909_v46, 0.0 }
 0x23a   : > { %582 = vadd.xlane.f32.xlu1 %v581_v47 }
 0x2c7   : > { %v583_v48 = vpop.xlane.xlu1 %582 }
 0x2c8   : > { %910 = vrcp.f32 %v583_v48 }
 0x2d2   : > { %v911_v49 = vpop.eup %910 }
 0x2d3   : > { %v585_v50 = vmul.f32 %v911_v49, %v909_v46 }
 0x2d5   : > { %v590_v51 = vmul.f32 %v585_v50, %v1098_v11  ;;  %v588_v52 = vmul.f32 %v585_v50, %v1090_v7  ;;  %587 = vst.msk [vmem:[%s1203_s13] sm:$0x1] %vm586_vm2, %v585_v50  ;;  %v592_v55 = vmul.f32 %v585_v50, %v1106_v14  ;;  %v589_v56 = vmul.f32 %v585_v50, %v1093_v8 }
 0x2d6   : > { %v594_v7 = vmul.f32 %v585_v50, %v1114_v17  ;;  %v591_v58 = vmul.f32 %v585_v50, %v1101_v12  ;;  %v596_v14 = vmul.f32 %v585_v50, %v1129_v22  ;;  %v593_v8 = vmul.f32 %v585_v50, %v1109_v15 }
 0x2d7   : > { %v610_v53 = vsel %vm561_vm1, %v590_v51, 0.0  ;;  %v604_v54 = vsel %vm561_vm1, %v588_v52, 0.0  ;;  %v616_v57 = vsel %vm561_vm1, %v592_v55, 0.0  ;;  %v607_v11 = vsel %vm561_vm1, %v589_v56, 0.0 }
 0x2d8   : > { %611 = vadd.xlane.f32.xlu1 %v610_v53  ;;  %605 = vadd.xlane.f32.xlu0 %v604_v54  ;;  %v622_v59 = vsel %vm561_vm1, %v594_v7, 0.0  ;;  %v613_v60 = vsel %vm561_vm1, %v591_v58, 0.0  ;;  %v628_v61 = vsel %vm561_vm1, %v596_v14, 0.0  ;;  %v619_v62 = vsel %vm561_vm1, %v593_v8, 0.0 }
 0x2d9   : > { %v598_v17 = vmul.f32 %v585_v50, %v1142_v26  ;;  %v595_v12 = vmul.f32 %v585_v50, %v1117_v18  ;;  %v600_v22 = vmul.f32 %v585_v50, %v1150_v29  ;;  %v597_v15 = vmul.f32 %v585_v50, %v1132_v23 }
 0x2da   : > { %v602_v26 = vmul.f32 %v585_v50, %v1158_v32  ;;  %v599_v18 = vmul.f32 %v585_v50, %v1145_v27  ;;  %v601_v23 = vmul.f32 %v585_v50, %v1153_v30  ;;  %v603_v5 = vmul.f32 %v585_v50, %v1161_v33 }
 0x2db   : > { %v634_v63 = vsel %vm561_vm1, %v598_v17, 0.0  ;;  %v625_v0 = vsel %vm561_vm1, %v595_v12, 0.0  ;;  %v640_v1 = vsel %vm561_vm1, %v600_v22, 0.0  ;;  %v631_v2 = vsel %vm561_vm1, %v597_v15, 0.0 }
 0x2dc   : > { %617 = vadd.xlane.f32.xlu1 %v616_v57  ;;  %608 = vadd.xlane.f32.xlu0 %v607_v11  ;;  %v646_v3 = vsel %vm561_vm1, %v602_v26, 0.0  ;;  %v637_v29 = vsel %vm561_vm1, %v599_v18, 0.0  ;;  %v643_v4 = vsel %vm561_vm1, %v601_v23, 0.0  ;;  %v649_v32 = vsel %vm561_vm1, %v603_v5, 0.0 }
 0x2e0   : > { %623 = vadd.xlane.f32.xlu1 %v622_v59  ;;  %614 = vadd.xlane.f32.xlu0 %v613_v60 }
 0x2e4   : > { %629 = vadd.xlane.f32.xlu1 %v628_v61  ;;  %620 = vadd.xlane.f32.xlu0 %v619_v62 }
 0x2e8   : > { %635 = vadd.xlane.f32.xlu1 %v634_v63  ;;  %626 = vadd.xlane.f32.xlu0 %v625_v0 }
 0x2ec   : > { %641 = vadd.xlane.f32.xlu1 %v640_v1  ;;  %632 = vadd.xlane.f32.xlu0 %v631_v2 }
 0x2f0   : > { %647 = vadd.xlane.f32.xlu1 %v646_v3  ;;  %638 = vadd.xlane.f32.xlu0 %v637_v29 }
 0x2f4   : > { %644 = vadd.xlane.f32.xlu0 %v643_v4 }
 0x2f8   : > { %650 = vadd.xlane.f32.xlu0 %v649_v32 }
 0x2f9   : > { %925 = shalt.err (!%p922_p3)
}
 0x2fa   : > { %s926_s28 = scalar_lea.hbm %s1240_s19, 16  ;;  %s930_s14 = scalar_lea.hbm %s1325_s7, 32 }
 0x2fb   : > { %p927_p4 = scmp.ne.s32.totalorder %s1240_s19, %s926_s28  ;;  %p931_p9 = scmp.lt.u32.totalorder %s1240_s19, %s1325_s7 }
 0x2fc   : > { %p932_p10 = scmp.lt.u32.totalorder %s930_s14, %s926_s28  ;;  %p934_p12 = scmp.lt.u32.totalorder %s926_s28, %s1240_s19 }
 0x2fd   : > { %p928_p7 = pnand %p927_p4, %p1056_p5 }
 0x2fe   : > { %p933_p11 = por %p932_p10, %p931_p9 }
 0x2ff   : > { %p929_p8 = pneg %p928_p7 }
 0x300   : > { %p935_p13 = por %p934_p12, %p933_p11 }
 0x302   : > { %p936_p0 = pnand %p935_p13, %p929_p8 }
 0x304   : > { %939 = shalt.err (!%p936_p0)
}
 0x305   : > { %864 = dma.vmem_to_hbm [thread:$0]  (%p1056_p5), %s691_s20, 16, %s1240_s19, %s675_s21   ;;  %vm652_vm3 = vcmask 7168  }
 0x306   : > { %s1267_s22 = scalar_lea.vmem %s1324_s6, %s801_s18 }
 0x365   : > { %v612_v27 = vpop.xlane.xlu1 %611  ;;  %v606_v30 = vpop.xlane.xlu0 %605 }
 0x366   : > { %655 = vst.msk [vmem:[%s1267_s22 + $0x10] sm:$0xff] %vm652_vm3, %v612_v27  ;;  %653 = vst.msk [vmem:[%s1267_s22] sm:$0xff] %vm652_vm3, %v606_v30 }
 0x369   : > { %v618_v33 = vpop.xlane.xlu1 %617  ;;  %v609_v6 = vpop.xlane.xlu0 %608 }
 0x36a   : > { %657 = vst.msk [vmem:[%s1267_s22 + $0x20] sm:$0xff] %vm652_vm3, %v618_v33  ;;  %654 = vst.msk [vmem:[%s1267_s22 + $0x8] sm:$0xff] %vm652_vm3, %v609_v6 }
 0x36d   : > { %v624_v9 = vpop.xlane.xlu1 %623  ;;  %v615_v10 = vpop.xlane.xlu0 %614 }
 0x36e   : > { %659 = vst.msk [vmem:[%s1267_s22 + $0x30] sm:$0xff] %vm652_vm3, %v624_v9  ;;  %656 = vst.msk [vmem:[%s1267_s22 + $0x18] sm:$0xff] %vm652_vm3, %v615_v10 }
 0x371   : > { %v630_v13 = vpop.xlane.xlu1 %629  ;;  %v621_v16 = vpop.xlane.xlu0 %620 }
 0x372   : > { %661 = vst.msk [vmem:[%s1267_s22 + $0x40] sm:$0xff] %vm652_vm3, %v630_v13  ;;  %658 = vst.msk [vmem:[%s1267_s22 + $0x28] sm:$0xff] %vm652_vm3, %v621_v16 }
 0x375   : > { %v636_v19 = vpop.xlane.xlu1 %635  ;;  %v627_v20 = vpop.xlane.xlu0 %626 }
 0x376   : > { %663 = vst.msk [vmem:[%s1267_s22 + $0x50] sm:$0xff] %vm652_vm3, %v636_v19  ;;  %660 = vst.msk [vmem:[%s1267_s22 + $0x38] sm:$0xff] %vm652_vm3, %v627_v20 }
 0x379   : > { %v642_v21 = vpop.xlane.xlu1 %641  ;;  %v633_v24 = vpop.xlane.xlu0 %632 }
 0x37a   : > { %665 = vst.msk [vmem:[%s1267_s22 + $0x60] sm:$0xff] %vm652_vm3, %v642_v21  ;;  %662 = vst.msk [vmem:[%s1267_s22 + $0x48] sm:$0xff] %vm652_vm3, %v633_v24 }
 0x37d   : > { %v648_v25 = vpop.xlane.xlu1 %647  ;;  %v639_v28 = vpop.xlane.xlu0 %638 }
 0x37e   : > { %667 = vst.msk [vmem:[%s1267_s22 + $0x70] sm:$0xff] %vm652_vm3, %v648_v25  ;;  %664 = vst.msk [vmem:[%s1267_s22 + $0x58] sm:$0xff] %vm652_vm3, %v639_v28 }
 0x381   : > { %v645_v31 = vpop.xlane.xlu0 %644 }
 0x382   : > { %666 = vst.msk [vmem:[%s1267_s22 + $0x68] sm:$0xff] %vm652_vm3, %v645_v31 }
 0x385   : > { %v651_v34 = vpop.xlane.xlu0 %650 }
 0x386   : > { %668 = vst.msk [vmem:[%s1267_s22 + $0x78] sm:$0xff] %vm652_vm3, %v651_v34 }
 0x387 PF: > { %p870_p5 = scmp.ge.s32.totalorder %s974_s27, 2  ;;  %s710_s11 = sand.u32 1, %s962_s24  }
 0x388   : > { %s711_s15 = scalar_lea.sflag [#allocation3], %s710_s11 }
 0x389   : > { %p867_p1 = pnand %p870_p5, %p1060_p6 }
 0x38b   : > { %957 = dma.done.wait (!%p867_p1), %s711_s15, 16  }
 0x38c   : > { %959 = vsyncadd (!%p867_p1), %s711_s15, 4294967280  ;;  %p18_p2 = scmp.ge.s32.totalorder %s1043_s30, 4   ;;  %s1328_s24 = smov %s966_s25 }
 0x38d   : > { %s1329_s25 = smov %s970_s26  ;;  %s1330_s26 = smov %s1054_s10 }
 0x38e   : > { %s1331_s27 = smov %s1043_s30  ;;  %20 = sbr.rel (!%p18_p2) target bundleno = 3 (0x3), region = 94 }
 0x395   :  { %715 = vsyncpa [#allocation3], 1 }
 0x396   :  { %717 = vsyncpa [#allocation3 + $0x1], 1 }

</bundles_post_ra>
